<compile_context>
chip_gen: v6e
topology: v6e:2x2x1
jax: 0.10.0
libtpu: 0.0.40
codegen_flags: <defaults>
</compile_context>

<pallas_src>
import math
import numpy as np
import jax
import jax.numpy as jnp
from jax.experimental import pallas as pl
from jax.experimental.pallas import tpu as pltpu

_EPS = 1e-12              # torch.nn.functional.normalize default eps
_MAX_BLOCK_BYTES = 2 << 20  # ~2 MiB per x input block (mem-bound sweet spot)
_MIN_GRID_STEPS = 4         # keep >=4 steps so v7x's 2 TensorCores stay busy


# ------------------------------- helpers --------------------------------------
def _round_up(x, m):
    return (x + m - 1) // m * m


def _sublane_multiple(dtype):
    # rows per vreg sublane tile: f32 -> 8, bf16 -> 16, int8/fp8 -> 32
    return 8 * max(1, 4 // jnp.dtype(dtype).itemsize)


def _pick_tile(candidates, cap, batch, n_total, min_steps):
    """candidates: ascending tile sizes that divide n_total. Pick the largest
    tile <= cap that still leaves >= min_steps total grid steps; fall back
    gracefully if neither constraint can be met."""
    ok = [t for t in candidates if t <= cap] or [candidates[0]]
    good = [t for t in ok if batch * (n_total // t) >= min_steps]
    return max(good) if good else max(ok)


# ------------------------------- kernels ---------------------------------------
def _rmsnorm_sublane_kernel(x_ref, g_ref, o_ref):
    # x_ref: (1, C, s_tile) native dtype; g_ref: (C, 1) f32 (already * sqrt(C)).
    x = x_ref[0].astype(jnp.float32)                      # (C, s_tile)
    sumsq = jnp.sum(x * x, axis=0, keepdims=True)         # (1, s_tile) XLU reduce
    inv = jax.lax.rsqrt(jnp.maximum(sumsq, _EPS * _EPS))  # == 1 / max(||x||, eps)
    o_ref[0] = (x * inv * g_ref[...]).astype(o_ref.dtype)


def _make_rows_kernel(C):
    def kernel(x_ref, g_ref, o_ref):
        # x_ref: (1, C, r_tile, 128) native dtype; g_ref: SMEM (C,) f32 (* sqrt(C)).
        xs = [x_ref[0, c].astype(jnp.float32) for c in range(C)]   # dense vregs
        sumsq = xs[0] * xs[0]
        for c in range(1, C):                                      # unrolled VPU adds
            sumsq = sumsq + xs[c] * xs[c]
        inv = jax.lax.rsqrt(jnp.maximum(sumsq, _EPS * _EPS))
        for c in range(C):
            o_ref[0, c] = (xs[c] * inv * g_ref[c]).astype(o_ref.dtype)
    return kernel


# ------------------------------- wrapper ---------------------------------------
def rms_norm_3d(x, g):
    """x: (B, C, H, W, D); g: (1, C, 1, 1, 1). Returns RMSNorm3D.forward(x)."""
    B, C, H, W, D = x.shape
    S = H * W * D
    itemsize = jnp.dtype(x.dtype).itemsize
    x2 = x.reshape(B, C, S)
    # fold sqrt(C) into the gain once, in f32
    g_scaled = g.reshape(C).astype(jnp.float32) * float(math.sqrt(C))

    # small / non-multiple-of-8 channel counts -> dense (rows, 128) layout
    use_rows = (C < 8 or C % 8 != 0) and C <= 32

    if use_rows:
        R = _round_up(pl.cdiv(S, 128), 8)      # rows of 128 lanes, multiple of 8
        S_pad = R * 128
        if S_pad != S:
            x2 = jnp.pad(x2, ((0, 0), (0, 0), (0, S_pad - S)))
        x4 = x2.reshape(B, C, R, 128)

        cap_rows = max(8, _MAX_BLOCK_BYTES // (C * 128 * itemsize))
        cands = [t for t in range(8, R + 1, 8) if R % t == 0]
        r_tile = _pick_tile(cands, cap_rows, B, R, _MIN_GRID_STEPS)
        grid = (B, R // r_tile)

        out = pl.pallas_call(
            _make_rows_kernel(C),
            out_shape=jax.ShapeDtypeStruct((B, C, R, 128), x.dtype),
            grid=grid,
            in_specs=[
                pl.BlockSpec((1, C, r_tile, 128), lambda b, s: (b, 0, s, 0)),
                pl.BlockSpec(memory_space=pltpu.MemorySpace.SMEM),   # g: (C,) scalars
            ],
            out_specs=pl.BlockSpec((1, C, r_tile, 128), lambda b, s: (b, 0, s, 0)),
            compiler_params=pltpu.CompilerParams(
                dimension_semantics=("parallel", "parallel")),
        )(x4, g_scaled)
        out = out.reshape(B, C, S_pad)
    else:
        S_pad = _round_up(S, 128)
        if S_pad != S:
            x2 = jnp.pad(x2, ((0, 0), (0, 0), (0, S_pad - S)))

        padded_C = _round_up(C, _sublane_multiple(x.dtype))   # sublane padding counts
        cap_cols = max(128, _MAX_BLOCK_BYTES // (padded_C * itemsize))
        cands = [t for t in range(128, S_pad + 1, 128) if S_pad % t == 0]
        s_tile = _pick_tile(cands, cap_cols, B, S_pad, _MIN_GRID_STEPS)
        grid = (B, S_pad // s_tile)

        out = pl.pallas_call(
            _rmsnorm_sublane_kernel,
            out_shape=jax.ShapeDtypeStruct((B, C, S_pad), x.dtype),
            grid=grid,
            in_specs=[
                pl.BlockSpec((1, C, s_tile), lambda b, s: (b, 0, s)),
                pl.BlockSpec((C, 1), lambda b, s: (0, 0)),
            ],
            out_specs=pl.BlockSpec((1, C, s_tile), lambda b, s: (b, 0, s)),
            compiler_params=pltpu.CompilerParams(
                dimension_semantics=("parallel", "parallel")),
        )(x2, g_scaled.reshape(C, 1))

    if S_pad != S:
        out = out[:, :, :S]
    return out.reshape(B, C, H, W, D)


# ------------------------------- pure-JAX reference ----------------------------
def _reference(x, g):
    C = x.shape[1]
    xf = x.astype(jnp.float32)
    norm = jnp.sqrt(jnp.sum(jnp.square(xf), axis=1, keepdims=True))
    return xf / jnp.maximum(norm, _EPS) * g.astype(jnp.float32) * (C ** 0.5)


if __name__ == "__main__":
    key = jax.random.PRNGKey(0)
    B, C, H, W, D = 2, 4, 16, 16, 16
    k1, k2, k3 = jax.random.split(key, 3)
    x = jax.random.normal(k1, (B, C, H, W, D), jnp.float32)
    g = 1.0 + 0.1 * jax.random.normal(k2, (1, C, 1, 1, 1), jnp.float32)

    out = rms_norm_3d(x, g)                    # small-C (rows) path, f32
    jax.block_until_ready(out)
    np.testing.assert_allclose(np.asarray(out), np.asarray(_reference(x, g)),
                               rtol=1e-5, atol=1e-5)

    # Also exercise the sublane path (C % 8 == 0), bf16 input, and S % 128 != 0.
    C2 = 16
    x_b = jax.random.normal(k3, (1, C2, 5, 5, 5), jnp.bfloat16)
    g_b = jnp.ones((1, C2, 1, 1, 1), jnp.float32)
    out_b = rms_norm_3d(x_b, g_b)
    jax.block_until_ready(out_b)
    assert out_b.dtype == jnp.bfloat16
    np.testing.assert_allclose(np.asarray(out_b, dtype=np.float32),
                               np.asarray(_reference(x_b, g_b)),
                               rtol=3e-2, atol=3e-2)

    print("KERNEL_OK")
</pallas_src>

<mosaic_0001>
module attributes {stable_mosaic.version = 11 : i64} {
  func.func @kernel(%arg0: i32, %arg1: i32, %arg2: memref<1x4x16x128xf32, #tpu.memory_space<vmem>>, %arg3: memref<4xf32, #tpu.memory_space<smem>>, %arg4: memref<1x4x16x128xf32, #tpu.memory_space<vmem>>) attributes {dimension_semantics = [#tpu.dimension_semantics<parallel>, #tpu.dimension_semantics<parallel>], iteration_bounds = array<i64: 2, 2>, scalar_prefetch = 0 : i64, scratch_operands = 0 : i64, tpu.core_type = #tpu.core_type<tc>, window_params = [{transform_indices = @transform_0, window_bounds = array<i64: 1, 4, 16, 128>}, {transform_indices = @transform_1, window_bounds = array<i64: 4>}, {transform_indices = @transform_2, window_bounds = array<i64: 1, 4, 16, 128>}]} {
    %c0 = arith.constant 0 : index
    %c0_0 = arith.constant 0 : index
    %c0_1 = arith.constant 0 : index
    %c0_2 = arith.constant 0 : index
    %0 = vector.load %arg2[%c0, %c0_0, %c0_1, %c0_2] : memref<1x4x16x128xf32, #tpu.memory_space<vmem>>, vector<1x1x16x128xf32>
    %1 = vector.shape_cast %0 : vector<1x1x16x128xf32> to vector<16x128xf32>
    %c0_3 = arith.constant 0 : index
    %c1 = arith.constant 1 : index
    %c0_4 = arith.constant 0 : index
    %c0_5 = arith.constant 0 : index
    %2 = vector.load %arg2[%c0_3, %c1, %c0_4, %c0_5] : memref<1x4x16x128xf32, #tpu.memory_space<vmem>>, vector<1x1x16x128xf32>
    %3 = vector.shape_cast %2 : vector<1x1x16x128xf32> to vector<16x128xf32>
    %c0_6 = arith.constant 0 : index
    %c2 = arith.constant 2 : index
    %c0_7 = arith.constant 0 : index
    %c0_8 = arith.constant 0 : index
    %4 = vector.load %arg2[%c0_6, %c2, %c0_7, %c0_8] : memref<1x4x16x128xf32, #tpu.memory_space<vmem>>, vector<1x1x16x128xf32>
    %5 = vector.shape_cast %4 : vector<1x1x16x128xf32> to vector<16x128xf32>
    %c0_9 = arith.constant 0 : index
    %c3 = arith.constant 3 : index
    %c0_10 = arith.constant 0 : index
    %c0_11 = arith.constant 0 : index
    %6 = vector.load %arg2[%c0_9, %c3, %c0_10, %c0_11] : memref<1x4x16x128xf32, #tpu.memory_space<vmem>>, vector<1x1x16x128xf32>
    %7 = vector.shape_cast %6 : vector<1x1x16x128xf32> to vector<16x128xf32>
    %8 = arith.mulf %1, %1 : vector<16x128xf32>
    %9 = arith.mulf %3, %3 : vector<16x128xf32>
    %10 = arith.addf %8, %9 : vector<16x128xf32>
    %11 = arith.mulf %5, %5 : vector<16x128xf32>
    %12 = arith.addf %10, %11 : vector<16x128xf32>
    %13 = arith.mulf %7, %7 : vector<16x128xf32>
    %14 = arith.addf %12, %13 : vector<16x128xf32>
    %cst = arith.constant 1.000000e-24 : f32
    %15 = vector.broadcast %cst : f32 to vector<16x128xf32>
    %16 = arith.maximumf %14, %15 : vector<16x128xf32>
    %17 = math.rsqrt %16 : vector<16x128xf32>
    %18 = arith.mulf %1, %17 : vector<16x128xf32>
    %c0_12 = arith.constant 0 : index
    %19 = memref.load %arg3[%c0_12] : memref<4xf32, #tpu.memory_space<smem>>
    %20 = vector.broadcast %19 : f32 to vector<16x128xf32>
    %21 = arith.mulf %18, %20 : vector<16x128xf32>
    %c0_13 = arith.constant 0 : index
    %c0_14 = arith.constant 0 : index
    %c0_15 = arith.constant 0 : index
    %c0_16 = arith.constant 0 : index
    %22 = vector.load %arg4[%c0_13, %c0_14, %c0_15, %c0_16] : memref<1x4x16x128xf32, #tpu.memory_space<vmem>>, vector<1x1x16x128xf32>
    %23 = vector.shape_cast %22 : vector<1x1x16x128xf32> to vector<16x128xf32>
    %24 = vector.shape_cast %21 : vector<16x128xf32> to vector<1x1x16x128xf32>
    tpu.vector_store %arg4[%c0_13, %c0_14, %c0_15, %c0_16], %24 {strides = array<i32>} : memref<1x4x16x128xf32, #tpu.memory_space<vmem>>, vector<1x1x16x128xf32>,
    %25 = arith.mulf %3, %17 : vector<16x128xf32>
    %c1_17 = arith.constant 1 : index
    %26 = memref.load %arg3[%c1_17] : memref<4xf32, #tpu.memory_space<smem>>
    %27 = vector.broadcast %26 : f32 to vector<16x128xf32>
    %28 = arith.mulf %25, %27 : vector<16x128xf32>
    %c0_18 = arith.constant 0 : index
    %c1_19 = arith.constant 1 : index
    %c0_20 = arith.constant 0 : index
    %c0_21 = arith.constant 0 : index
    %29 = vector.load %arg4[%c0_18, %c1_19, %c0_20, %c0_21] : memref<1x4x16x128xf32, #tpu.memory_space<vmem>>, vector<1x1x16x128xf32>
    %30 = vector.shape_cast %29 : vector<1x1x16x128xf32> to vector<16x128xf32>
    %31 = vector.shape_cast %28 : vector<16x128xf32> to vector<1x1x16x128xf32>
    tpu.vector_store %arg4[%c0_18, %c1_19, %c0_20, %c0_21], %31 {strides = array<i32>} : memref<1x4x16x128xf32, #tpu.memory_space<vmem>>, vector<1x1x16x128xf32>,
    %32 = arith.mulf %5, %17 : vector<16x128xf32>
    %c2_22 = arith.constant 2 : index
    %33 = memref.load %arg3[%c2_22] : memref<4xf32, #tpu.memory_space<smem>>
    %34 = vector.broadcast %33 : f32 to vector<16x128xf32>
    %35 = arith.mulf %32, %34 : vector<16x128xf32>
    %c0_23 = arith.constant 0 : index
    %c2_24 = arith.constant 2 : index
    %c0_25 = arith.constant 0 : index
    %c0_26 = arith.constant 0 : index
    %36 = vector.load %arg4[%c0_23, %c2_24, %c0_25, %c0_26] : memref<1x4x16x128xf32, #tpu.memory_space<vmem>>, vector<1x1x16x128xf32>
    %37 = vector.shape_cast %36 : vector<1x1x16x128xf32> to vector<16x128xf32>
    %38 = vector.shape_cast %35 : vector<16x128xf32> to vector<1x1x16x128xf32>
    tpu.vector_store %arg4[%c0_23, %c2_24, %c0_25, %c0_26], %38 {strides = array<i32>} : memref<1x4x16x128xf32, #tpu.memory_space<vmem>>, vector<1x1x16x128xf32>,
    %39 = arith.mulf %7, %17 : vector<16x128xf32>
    %c3_27 = arith.constant 3 : index
    %40 = memref.load %arg3[%c3_27] : memref<4xf32, #tpu.memory_space<smem>>
    %41 = vector.broadcast %40 : f32 to vector<16x128xf32>
    %42 = arith.mulf %39, %41 : vector<16x128xf32>
    %c0_28 = arith.constant 0 : index
    %c3_29 = arith.constant 3 : index
    %c0_30 = arith.constant 0 : index
    %c0_31 = arith.constant 0 : index
    %43 = vector.load %arg4[%c0_28, %c3_29, %c0_30, %c0_31] : memref<1x4x16x128xf32, #tpu.memory_space<vmem>>, vector<1x1x16x128xf32>
    %44 = vector.shape_cast %43 : vector<1x1x16x128xf32> to vector<16x128xf32>
    %45 = vector.shape_cast %42 : vector<16x128xf32> to vector<1x1x16x128xf32>
    tpu.vector_store %arg4[%c0_28, %c3_29, %c0_30, %c0_31], %45 {strides = array<i32>} : memref<1x4x16x128xf32, #tpu.memory_space<vmem>>, vector<1x1x16x128xf32>,
    return
  }
  func.func @transform_0(%arg0: i32, %arg1: i32) -> (i32, i32, i32, i32) {
    %c0_i32 = arith.constant 0 : i32
    %c0_i32_0 = arith.constant 0 : i32
    %c0_i32_1 = arith.constant 0 : i32
    return %arg0, %c0_i32, %arg1, %c0_i32_0 : i32, i32, i32, i32
  }
  func.func @transform_1(%arg0: i32, %arg1: i32) -> i32 {
    %c0_i32 = arith.constant 0 : i32
    %c0_i32_0 = arith.constant 0 : i32
    return %c0_i32 : i32
  }
  func.func @transform_2(%arg0: i32, %arg1: i32) -> (i32, i32, i32, i32) {
    %c0_i32 = arith.constant 0 : i32
    %c0_i32_0 = arith.constant 0 : i32
    %c0_i32_1 = arith.constant 0 : i32
    return %arg0, %c0_i32, %arg1, %c0_i32_0 : i32, i32, i32, i32
  }
}

</mosaic_0001>

<bundles_post_ra>
// kernel: tpu_custom_call.1
= control target key start
LH: loop header
LB: loop body
LE: loop exit
PB: predicated region body
PF: predicated region fallthrough
CT: control target
= control target key end

     0   :  { %s883_s0 = inlined_call_operand.hbm [shape: f32[2,4,32,128], index: 0, kind: input, shape index: {}]   ;;  %s884_s1 = inlined_call_operand.vmem [shape: f32[4], index: 1, kind: input, shape index: {}]   ;;  %s885_s2 = inlined_call_operand.hbm [shape: f32[2,4,32,128], index: 2, kind: output, shape index: {}]  }
   0x1   :  { %890 = sst [smem:[#allocation18_spill]] %s884_s1 }
   0x2   :  { %7 = vsyncpa [#allocation3], 0 }
   0x3   :  { %9 = vsyncpa [#allocation3 + $0x1], 0 }
   0x4   :  { %10 = vsyncpa [#allocation5], 0 }
   0x5   :  { %11 = vsyncpa [#allocation4], 0 }
   0x6   :  { %13 = vsyncpa [#allocation4 + $0x1], 0  ;;  %s696_s9 = smov 0   ;;  %s698_s10 = smov 0  }
   0x7   :  { %s700_s11 = smov 0   ;;  %s702_s12 = smov 0  }
   0x8   :  { %s704_s13 = smov 0   ;;  %s706_s14 = smov 0  }
   0x9   :  { %s708_s15 = smov 0   ;;  %s710_s16 = smov 0  }
   0xa LB: > { %s426_s17 = sadd.s32 4294967295, %s665_s16   ;;  %s427_s18 = sadd.s32 4294967294, %s665_s16   ;;  %s665_s16 = sphi %s710_s16, %s19_s16   ;;  %s661_s15 = sphi %s708_s15, %s911_s15   ;;  %s657_s14 = sphi %s706_s14, %s910_s14   ;;  %s653_s13 = sphi %s704_s13, %s909_s13   ;;  %s649_s12 = sphi %s702_s12, %s908_s12   ;;  %s645_s11 = sphi %s700_s11, %s907_s11   ;;  %s641_s10 = sphi %s698_s10, %s906_s10   ;;  %s637_s9 = sphi %s696_s9, %s905_s9  }
   0xb   : > { %s28_s19 = sadd.s32 1, %s657_s14  ;;  %s31_s20 = sadd.s32 1, %s661_s15 }
   0xc   : > { %p29_p0 = scmp.ge.s32.totalorder %s28_s19, 2  ;;  %s40_s21 = sadd.s32 1, %s645_s11 }
   0xd   : > { %p47_p1 = scmp.ne.s32.totalorder %s645_s11, %s641_s10  ;;  %p48_p2 = scmp.eq.s32.totalorder %s665_s16, 0 }
   0xe   : > { %s913_s19 = smov (%p29_p0, %s28_s19), 0  ;;  %s915_s20 = smov (!%p29_p0, %s31_s20), %s661_s15 }
   0xf   : > { %891 = sst [smem:[#allocation16_spill]] %s913_s19  ;;  %s36_s22 = ssub.s32 %s657_s14, %s913_s19 }
  0x10   : > { %p749_p3 = por %p48_p2, %p47_p1  ;;  %p33_p4 = scmp.ge.s32.totalorder %s915_s20, 2 }
  0x11   : > { %p53_p5 = scmp.ne.s32.totalorder %s641_s10, %s637_s9  ;;  %p755_p6 = scmp.eq.s32.totalorder %s426_s17, 0 }
  0x12   : > { %p100_p7 = scmp.eq.s32.totalorder %s426_s17, 3  ;;  %s917_s20 = smov (%p33_p4, %s915_s20), 0 }
  0x13   : > { %894 = sst [smem:[#allocation17_spill]] %s917_s20  ;;  %p763_p8 = por %p755_p6, %p53_p5 }
  0x14   : > { %p767_p9 = por %p100_p7, %p47_p1  ;;  %s35_s27 = ssub.s32 %s661_s15, %s917_s20 }
  0x15   : > { %s895_s25 = scalar_select %p763_p8, 1, 0 }
  0x16   : > { %s896_s26 = scalar_select %p767_p9, 1, 0 }
  0x17   : > { %p106_p10 = scmp.eq.s32.totalorder %s427_s18, 3  ;;  %s37_s28 = sor.u32 %s36_s22, %s35_s27 }
  0x18   : > { %p428_p11 = scmp.ge.s32.totalorder %s665_s16, 1  ;;  %p38_p12 = scmp.eq.s32.totalorder %s37_s28, 0 }
  0x19   : > { %p774_p13 = por %p106_p10, %p53_p5  ;;  %p113_p0 = scmp.lt.s32.totalorder %s665_s16, 5 }
  0x1a   : > { %s780_s30 = scalar_select %p38_p12, %s645_s11, %s40_s21  }
  0x1b   : > { %s897_s29 = scalar_select %p774_p13, 1, 0 }
  0x1c   : > { %p782_p2 = pnand %p428_p11, %p113_p0  ;;  %s899_s1 = sld [smem:[#allocation18_spill]] }
  0x1e   : > { %p483_p1 = pneg %p782_p2 }
  0x20   : > { %p484_p4 = pnand %p483_p1, %p755_p6 }
  0x22   : > { %s126_s6 = sshll.u32 %s899_s1, 4  ;;  %p578_p7 = pneg %p484_p4  ;;  %s127_s6 = int_to_ptr.vmem [resolvable:$true] %s126_s6 }
  0x23   : > { %s576_s7 = scalar_lea.vmem %s127_s6, 16  ;;  %p584_p13 = scmp.lt.s32.totalorder %s127_s6, %s127_s6 }
  0x24   : > { %p577_p5 = scmp.ne.s32.totalorder %s127_s6, %s576_s7  ;;  %p585_p11 = scmp.lt.s32.totalorder %s576_s7, %s576_s7 }
  0x26   : > { %p579_p10 = pnand %p578_p7, %p577_p5  ;;  %p586_p0 = por %p585_p11, %p584_p13 }
  0x28   : > { %p580_p12 = pneg %p579_p10 }
  0x2a   : > { %p587_p9 = pnand %p586_p0, %p580_p12 }
  0x2c   : > { %590 = shalt.err (!%p587_p9)
}
  0x2d   : > { %s667_s8 = smov [#allocation6]   ;;  %p430_p8 = scmp.ge.s32.totalorder %s665_s16, 4 }
  0x2e   : > { %486 = dma.vmem_to_smem (!%p484_p4), %s127_s6, 16, %s667_s8, [#allocation5]  }
  0x2f   : > { %133 = sbr.rel (%p430_p8) target bundleno = 68 (0x44), region = 20 }
  0x34   : > { %s137_s17 = sand.u32 1, %s645_s11   ;;  %s432_s18 = sshll.u32 %s657_s14, 1 }
  0x35   : > { %s431_s21 = sshll.u32 %s137_s17, 6  ;;  %s433_s22 = sshll.u32 %s661_s15, 4 }
  0x36   : > { %s147_s27 = sadd.s32 %s433_s22, %s432_s18  ;;  %s141_s28 = scalar_lea.vmem [#allocation2], %s431_s21 }
  0x37   : > { %s162_s4 = sshll.u32 %s141_s28, 4  ;;  %s434_s5 = sshll.u32 %s147_s27, 7  ;;  %s163_s4 = int_to_ptr.vmem [resolvable:$true] %s162_s4 }
  0x38   : > { %s464_s6 = scalar_select %p749_p3, [#allocation0], [#allocation12] }
  0x39   : > { %s668_s7 = smov 512   ;;  %s669_s1 = smov 256  }
  0x3a   : > { %465 = sst [smem:[#allocation9]] (%p749_p3), %s668_s7  ;;  %s670_s20 = smov 2  }
  0x3b   : > { %s154_s8 = sld [smem:[%s464_s6]]   ;;  %s671_s18 = smov 128  }
  0x3c   : > { %466 = sst [smem:[#allocation9 + $0x1]] (%p749_p3), %s669_s1  ;;  %s149_s27 = scalar_lea.hbm %s883_s0, %s434_s5 }
  0x3d   : > { %467 = sst [smem:[#allocation9 + $0x2]] (%p749_p3), %s670_s20  ;;  %s672_s28 = smov 8  }
  0x3e   : > { %468 = sst [smem:[#allocation9 + $0x3]] (%p749_p3), %s671_s18  ;;  %s138_s19 = scalar_lea.sflag [#allocation3], %s137_s17 }
  0x3f   : > { %469 = sst [smem:[#allocation9 + $0x4]] (%p749_p3), %s671_s18  ;;  %s673_s1 = smov 131072  }
  0x40   : > { %470 = sst [smem:[#allocation9 + $0x5]] (%p749_p3), %s672_s28 }
  0x41   : > { %s435_s6 = sshll.u32 %s154_s8, 26 }
  0x42   : > { %s436_s7 = sadd.s32 134217728, %s435_s6 }
  0x43   : > { %471 = dma.general (%p749_p3), %s149_s27, 1024, %s163_s4, %s138_s19, %s673_s1, [#allocation9], %s436_s7, 0  }
  0x44 PF: > { %187 = sbr.rel (%p782_p2) target bundleno = 123 (0x7b), region = 28  ;;  %s819_s20 = sand.u32 (!%p782_p2), 1, %s641_s10  }
  0x45   : > { %s438_s5 = sshll.u32 (!%p782_p2), %s819_s20, 6  ;;  %s190_s18 = scalar_lea.sflag (!%p782_p2), [#allocation3], %s819_s20 }
  0x46   : > { %s193_s8 = scalar_lea.vmem (!%p782_p2), [#allocation2], %s438_s5  ;;  %p900_p8 = scmp.ne.s32.totalorder (!%p782_p2), %s895_s25, 0 }
  0x49   : > { %624 = dma.done.wait (%p900_p8), %s190_s18, 1024  }
  0x4a   : > { %626 = vsyncadd (%p900_p8), %s190_s18, 4294966272 }
  0x4b   : > { %628 = dma.done.wait (%p755_p6), [#allocation5], 16  }
  0x4c   : > { %630 = vsyncadd (%p755_p6), [#allocation5], 4294967280 }
  0x4d   : > { %202 = sfence }
  0x4e   : > { %v221_v0 = vld [vmem:[%s193_s8] sm:$0xff]  ;;  %v441_v1 = vld [vmem:[%s193_s8 + $0x10] sm:$0xff]  ;;  %v222_v7 = vld [vmem:[%s193_s8 + $0x8] sm:$0xff]  ;;  %s252_s19 = sld [smem:[#allocation6]]  ;;  %s218_s3 = scalar_lea.vmem [#allocation7], %s438_s5 }
  0x4f   : > { %v443_v2 = vld [vmem:[%s193_s8 + $0x20] sm:$0xff]  ;;  %v445_v3 = vld [vmem:[%s193_s8 + $0x30] sm:$0xff]  ;;  %v232_v4 = vmul.f32 %v221_v0, %v221_v0  ;;  %v234_v5 = vmul.f32 %v441_v1, %v441_v1  ;;  %v442_v8 = vld [vmem:[%s193_s8 + $0x18] sm:$0xff]  ;;  %v233_v11 = vmul.f32 %v222_v7, %v222_v7  ;;  %s447_s23 = sld [smem:[#allocation6 + $0x1]]  ;;  %s286_s17 = scalar_lea.sflag [#allocation4], %s819_s20 }
  0x50   : > { %v238_v6 = vmul.f32 %v443_v2, %v443_v2  ;;  %v444_v9 = vld [vmem:[%s193_s8 + $0x28] sm:$0xff]  ;;  %v446_v10 = vld [vmem:[%s193_s8 + $0x38] sm:$0xff]  ;;  %v235_v12 = vmul.f32 %v442_v8, %v442_v8  ;;  %v242_v14 = vmul.f32 %v445_v3, %v445_v3  ;;  %s450_s24 = sld [smem:[#allocation6 + $0x2]] }
  0x51   : > { %v236_v13 = vadd.f32 %v234_v5, %v232_v4  ;;  %v239_v15 = vmul.f32 %v444_v9, %v444_v9  ;;  %v243_v17 = vmul.f32 %v446_v10, %v446_v10  ;;  %s453_s25 = sld [smem:[#allocation6 + $0x3]] }
  0x52   : > { %v237_v16 = vadd.f32 %v235_v12, %v233_v11 }
  0x53   : > { %v240_v18 = vadd.f32 %v238_v6, %v236_v13 }
  0x54   : > { %v241_v19 = vadd.f32 %v239_v15, %v237_v16  ;;  %v253_v25 = vstv %s252_s19 }
  0x55   : > { %v244_v20 = vadd.f32 %v242_v14, %v240_v18  ;;  %v261_v26 = vstv %s447_s23 }
  0x56   : > { %v245_v21 = vadd.f32 %v243_v17, %v241_v19  ;;  %v270_v27 = vstv %s450_s24 }
  0x57   : > { %v246_v22 = vmax.f32 %v244_v20, 1e-24  ;;  %v279_v28 = vstv %s453_s25 }
  0x58   : > { %v247_v23 = vmax.f32 %v245_v21, 1e-24 }
  0x59   : > { %572 = vrsqrt.f32 %v246_v22 }
  0x5a   : > { %574 = vrsqrt.f32 %v247_v23 }
  0x66   : > { %v573_v24 = vpop.eup %572 }
  0x67   : > { %v575_v29 = vpop.eup %574  ;;  %v250_v30 = vmul.f32 %v573_v24, %v221_v0  ;;  %v258_v31 = vmul.f32 %v573_v24, %v441_v1  ;;  %v267_v32 = vmul.f32 %v573_v24, %v443_v2  ;;  %v276_v33 = vmul.f32 %v573_v24, %v445_v3 }
  0x68   : > { %v251_v34 = vmul.f32 %v575_v29, %v222_v7  ;;  %v259_v35 = vmul.f32 %v575_v29, %v442_v8  ;;  %v268_v36 = vmul.f32 %v575_v29, %v444_v9  ;;  %v277_v37 = vmul.f32 %v575_v29, %v446_v10 }
  0x69   : > { %v254_v38 = vmul.f32 %v253_v25, %v250_v30  ;;  %v262_v39 = vmul.f32 %v261_v26, %v258_v31  ;;  %v271_v40 = vmul.f32 %v270_v27, %v267_v32  ;;  %v280_v41 = vmul.f32 %v279_v28, %v276_v33 }
  0x6a   : > { %v255_v42 = vmul.f32 %v253_v25, %v251_v34  ;;  %v263_v43 = vmul.f32 %v261_v26, %v259_v35  ;;  %v272_v44 = vmul.f32 %v270_v27, %v268_v36  ;;  %v281_v45 = vmul.f32 %v279_v28, %v277_v37 }
  0x6b   : > { %256 = vst [vmem:[%s218_s3] sm:$0xff] %v254_v38  ;;  %448 = vst [vmem:[%s218_s3 + $0x10] sm:$0xff] %v262_v39 }
  0x6c   : > { %451 = vst [vmem:[%s218_s3 + $0x20] sm:$0xff] %v271_v40  ;;  %454 = vst [vmem:[%s218_s3 + $0x30] sm:$0xff] %v280_v41 }
  0x6d   : > { %257 = vst [vmem:[%s218_s3 + $0x8] sm:$0xff] %v255_v42  ;;  %449 = vst [vmem:[%s218_s3 + $0x18] sm:$0xff] %v263_v43 }
  0x6e   : > { %452 = vst [vmem:[%s218_s3 + $0x28] sm:$0xff] %v272_v44  ;;  %455 = vst [vmem:[%s218_s3 + $0x38] sm:$0xff] %v281_v45 }
  0x6f   : > { %s457_s4 = sshll.u32 %s649_s12, 1  ;;  %s458_s21 = sshll.u32 %s653_s13, 4 }
  0x70   : > { %s298_s22 = sadd.s32 %s458_s21, %s457_s4  ;;  %s311_s27 = sshll.u32 %s218_s3, 4  ;;  %s312_s27 = int_to_ptr.vmem [resolvable:$true] %s311_s27 }
  0x71   : > { %s459_s28 = sshll.u32 %s298_s22, 7  ;;  %s674_s20 = smov 256  }
  0x72   : > { %s300_s1 = scalar_lea.hbm %s885_s2, %s459_s28  ;;  %p901_p3 = scmp.ne.s32.totalorder %s896_s26, 0 }
  0x73   : > { %s675_s5 = smov 512   ;;  %s676_s18 = smov 2  }
  0x74   : > { %475 = sst [smem:[#allocation11]] (%p901_p3), %s674_s20  ;;  %s677_s12 = smov 128  }
  0x75   : > { %476 = sst [smem:[#allocation11 + $0x1]] (%p901_p3), %s675_s5  ;;  %s678_s13 = smov 8  }
  0x76   : > { %477 = sst [smem:[#allocation11 + $0x2]] (%p901_p3), %s676_s18  ;;  %s679_s8 = smov 131072  }
  0x77   : > { %478 = sst [smem:[#allocation11 + $0x3]] (%p901_p3), %s677_s12  ;;  %s680_s19 = smov 0  }
  0x78   : > { %479 = sst [smem:[#allocation11 + $0x4]] (%p901_p3), %s677_s12 }
  0x79   : > { %480 = sst [smem:[#allocation11 + $0x5]] (%p901_p3), %s678_s13 }
  0x7a   : > { %481 = dma.general (%p901_p3), %s312_s27, 1024, %s300_s1, %s286_s17, %s679_s8, [#allocation11], %s680_s19, 0  }
  0x7b PF: > { %p493_p6 = scmp.ge.s32.totalorder %s665_s16, 2  ;;  %s339_s23 = sand.u32 1, %s637_s9  }
  0x7c   : > { %p902_p9 = scmp.ne.s32.totalorder %s897_s29, 0  ;;  %s340_s24 = scalar_lea.sflag [#allocation4], %s339_s23 }
  0x7e   : > { %p488_p13 = pnand %p493_p6, %p902_p9 }
  0x80   : > { %p489_p2 = pneg %p488_p13 }
  0x82   : > { %632 = dma.done.wait (%p489_p2), %s340_s24, 1024  }
  0x83   : > { %634 = vsyncadd (%p489_p2), %s340_s24, 4294966272  ;;  %s19_s16 = sadd.s32 1, %s665_s16   ;;  %s903_s26 = sld [smem:[#allocation16_spill]] }
  0x84   : > { %p16_p1 = scmp.ge.s32.totalorder %s19_s16, 6   ;;  %s904_s25 = sld [smem:[#allocation17_spill]] }
  0x85   : > { %s905_s9 = smov %s641_s10  ;;  %s906_s10 = smov %s645_s11 }
  0x86   : > { %s907_s11 = smov %s780_s30  ;;  %s908_s12 = smov %s657_s14 }
  0x87   : > { %s909_s13 = smov %s661_s15  ;;  %18 = sbr.rel (!%p16_p1) target bundleno = 10 (0xa), region = 94 }
  0x89   : > { %s910_s14 = smov %s903_s26 }
  0x8a   : > { %s911_s15 = smov %s904_s25 }
  0x8c   :  { %345 = vsyncpa [#allocation3], 1 }
  0x8d   :  { %347 = vsyncpa [#allocation3 + $0x1], 1 }
  0x8e   :  { %348 = vsyncpa [#allocation4], 1 }
  0x8f   :  { %350 = vsyncpa [#allocation4 + $0x1], 1 }
  0x90   :  { %351 = vsyncpa [#allocation5], 1 }
  0x91   :  { %353 = vsyncpa [#allocation5 + $0x1], 1 }

</bundles_post_ra>
